<compile_context>
chip_gen: v7x
topology: tpu7x:2x2x1
jax: 0.10.0
libtpu: 0.0.40
codegen_flags: <defaults>
</compile_context>

<pallas_src>
import functools

import jax
import jax.numpy as jnp
from jax.experimental import pallas as pl
from jax.experimental.pallas import tpu as pltpu

FOLDS = 8
LANE = 128
SUBLANE = 8


# ----------------------------------------------------------------------------
# Helpers (plain JAX / Python glue)
# ----------------------------------------------------------------------------
def _round_up(n, m):
    return ((n + m - 1) // m) * m


def _pad_axis(x, axis, multiple):
    pad = (-x.shape[axis]) % multiple
    if pad == 0:
        return x
    widths = [(0, 0)] * x.ndim
    widths[axis] = (0, pad)
    return jnp.pad(x, widths)


def patchify_nchw(x, patch):
    """NCHW -> (B, P, C*p*p) in bf16, channel-major inside each patch (matches conv_proj)."""
    B, C, H, W = x.shape
    hp, wp = H // patch, W // patch
    x = x.astype(jnp.bfloat16)                          # cast first: half the transpose bytes
    x = x.reshape(B, C, hp, patch, wp, patch)
    x = jnp.transpose(x, (0, 2, 4, 1, 3, 5))            # (B, hp, wp, C, p, p)
    return x.reshape(B, hp * wp, C * patch * patch)     # (B, P, Dp) bf16


def _vmem_budget_bytes():
    """~75% of physical VMEM (v7x: ~48 MiB, v5e/v6e: ~96 MiB); conservative fallback."""
    try:
        cap = getattr(pltpu.get_tpu_info(), "vmem_capacity_bytes", None)
        if cap:
            return int(cap * 0.75)
    except Exception:
        pass
    return 48 << 20   # fits v7x's 64 MiB physical VMEM; safe everywhere


def _vmem_required_bytes(block_b, p_pad, dp_pad, hd_pad, f_pad, *, single_buffer):
    rows = block_b * p_pad
    wbuf = 1 if single_buffer else 2
    fixed = (wbuf * (dp_pad * hd_pad + hd_pad * f_pad) * 2    # resident weights (bf16)
             + wbuf * (hd_pad + f_pad) * 4)                   # resident biases (f32)
    per_step = (2 * rows * dp_pad * 2                         # patches block, double-buffered
                + rows * hd_pad * 4                           # f32 intermediate h
                + block_b * hd_pad * 4                        # pooled f32
                + 2 * block_b * f_pad * 4)                    # output block, double-buffered
    return int((fixed + per_step) * 1.25) + (2 << 20)         # headroom for compiler scratch


def _choose_block_b(B, p_pad, dp_pad, hd_pad, f_pad, budget):
    # Fill MXU rows (256 on v6e/v7x; 128 already saturates v5e) and give the tail matmul
    # M = block_b >= 8, but don't massively overshoot tiny batches.
    bb = max(8, pl.cdiv(256, p_pad))
    bb = min(bb, max(8, _round_up(B, SUBLANE)))
    while bb > 1 and _vmem_required_bytes(bb, p_pad, dp_pad, hd_pad, f_pad,
                                          single_buffer=False) > budget:
        bb = max(1, bb // 2)
    return bb


# ----------------------------------------------------------------------------
# Fused kernel: patch-proj matmul -> per-image mean pool -> combined head+classifiers
# ----------------------------------------------------------------------------
def fused_inferer_kernel(patches_ref, wp_ref, bp_ref, wc_ref, bc_ref, out_ref,
                         *, block_b, p_pad, inv_p):
    x = patches_ref[0]                                            # (block_b*P_pad, Dp_pad) bf16
    # ViT conv_proj as a matmul; f32 accumulation on the MXU.  No bias here: zero-padded
    # patch rows must stay zero, and mean(h + b) == mean(h) + b anyway.
    h = jnp.dot(x, wp_ref[...], preferred_element_type=jnp.float32)   # (rows, Hd_pad) f32

    # Per-image mean pooling: sublane-aligned reshape (P_pad % 8 == 0) + XLU reduction.
    hd = h.shape[-1]
    pooled = jnp.sum(h.reshape(block_b, p_pad, hd), axis=1) * inv_p   # (block_b, Hd_pad) f32
    pooled = pooled + bp_ref[...]                                     # patch-proj bias

    # Head + all FOLDS classifiers collapsed into one lane-dense matmul.
    logits = jnp.dot(pooled.astype(jnp.bfloat16), wc_ref[...],
                     preferred_element_type=jnp.float32) + bc_ref[...]  # (block_b, F_pad) f32

    out_ref[0] = logits


# ----------------------------------------------------------------------------
# Wrapper
# ----------------------------------------------------------------------------
def inferer_forward(x, params, *, patch, block_b=None):
    B, C, H, W = x.shape
    P = (H // patch) * (W // patch)

    # Patchify (bf16), pad the patch axis to a sublane multiple and Dp to full lanes.
    patches = patchify_nchw(x, patch)                  # (B, P, Dp) bf16
    patches = _pad_axis(patches, 1, SUBLANE)           # (B, P_pad, Dp)
    patches = _pad_axis(patches, 2, LANE)              # (B, P_pad, Dp_pad)  (no-op if aligned)
    P_pad, Dp_pad = patches.shape[1], patches.shape[2]

    # Weights: patch projection stays as-is; head + classifiers are collapsed in f32.
    wp = _pad_axis(_pad_axis(params["w_patch"], 0, LANE), 1, LANE).astype(jnp.bfloat16)
    bp = _pad_axis(params["b_patch"], 1, LANE).astype(jnp.float32)
    w_comb = params["w_head"].astype(jnp.float32) @ params["w_cls"].astype(jnp.float32)
    b_comb = (params["b_head"].astype(jnp.float32) @ params["w_cls"].astype(jnp.float32)
              + params["b_cls"].astype(jnp.float32))
    wc = _pad_axis(_pad_axis(w_comb, 0, LANE), 1, LANE).astype(jnp.bfloat16)
    bc = _pad_axis(b_comb, 1, LANE).astype(jnp.float32)
    Hd_pad, F_pad = wp.shape[1], wc.shape[1]

    # Block / VMEM sizing per generation.
    budget = _vmem_budget_bytes()
    if block_b is None:
        block_b = _choose_block_b(B, P_pad, Dp_pad, Hd_pad, F_pad, budget)
    patches = _pad_axis(patches, 0, block_b)           # pad batch to a multiple of block_b
    B_pad = patches.shape[0]
    G = B_pad // block_b
    rows = block_b * P_pad
    patches = patches.reshape(G, rows, Dp_pad)

    required = _vmem_required_bytes(block_b, P_pad, Dp_pad, Hd_pad, F_pad,
                                    single_buffer=False)
    vmem_limit = int(min(budget, max(required, 16 << 20)))

    kernel = functools.partial(fused_inferer_kernel, block_b=block_b, p_pad=P_pad,
                               inv_p=1.0 / P)

    flops = 2 * B_pad * P_pad * Dp_pad * Hd_pad + 2 * B_pad * Hd_pad * F_pad
    bytes_accessed = (G * rows * Dp_pad * 2
                      + (Dp_pad * Hd_pad + Hd_pad * F_pad) * 2
                      + (Hd_pad + F_pad) * 4
                      + B_pad * F_pad * 4)
    cost = pl.CostEstimate(flops=flops, transcendentals=0, bytes_accessed=bytes_accessed)

    def _call(single_buffer_weights):
        resident = {}
        if single_buffer_weights:
            resident = dict(pipeline_mode=pl.Buffered(1))   # weights never change block index
        in_specs = [
            pl.BlockSpec((1, rows, Dp_pad), lambda i: (i, 0, 0)),            # patches
            pl.BlockSpec((Dp_pad, Hd_pad), lambda i: (0, 0), **resident),    # w_patch
            pl.BlockSpec((1, Hd_pad), lambda i: (0, 0), **resident),         # b_patch
            pl.BlockSpec((Hd_pad, F_pad), lambda i: (0, 0), **resident),     # w_comb
            pl.BlockSpec((1, F_pad), lambda i: (0, 0), **resident),          # b_comb
        ]
        return pl.pallas_call(
            kernel,
            out_shape=jax.ShapeDtypeStruct((G, block_b, F_pad), jnp.float32),
            grid_spec=pltpu.PrefetchScalarGridSpec(
                num_scalar_prefetch=0,
                grid=(G,),
                in_specs=in_specs,
                out_specs=pl.BlockSpec((1, block_b, F_pad), lambda i: (i, 0, 0)),
            ),
            compiler_params=pltpu.CompilerParams(
                dimension_semantics=("parallel",),
                vmem_limit_bytes=vmem_limit,
            ),
            cost_estimate=cost,
        )(patches, wp, bp, wc, bc)

    try:
        out = _call(True)
    except Exception:
        # Older JAX without BlockSpec(pipeline_mode=...) support: fall back to default
        # double-buffered resident weights (correctness identical, slightly more VMEM).
        out = _call(False)

    logits = out.reshape(B_pad, F_pad)[:B, :FOLDS]                 # (B, FOLDS)
    # torch.cat([cls(emb) for cls in classifiers], dim=0): fold-major stacking of
    # per-fold (B, 1) outputs -> (FOLDS * B, 1).
    return jnp.transpose(logits, (1, 0)).reshape(FOLDS * B, 1)


# ----------------------------------------------------------------------------
# Params + pure-JAX reference (mirrors the kernel's bf16/f32 mixed precision)
# ----------------------------------------------------------------------------
def init_params(key, *, in_ch, patch, hidden, embed_dim):
    Dp = in_ch * patch * patch
    ks = jax.random.split(key, 6)
    scale = 0.02
    return {
        "w_patch": scale * jax.random.normal(ks[0], (Dp, hidden), jnp.float32),
        "b_patch": scale * jax.random.normal(ks[1], (1, hidden), jnp.float32),
        "w_head":  scale * jax.random.normal(ks[2], (hidden, embed_dim), jnp.float32),
        "b_head":  scale * jax.random.normal(ks[3], (1, embed_dim), jnp.float32),
        "w_cls":   scale * jax.random.normal(ks[4], (embed_dim, FOLDS), jnp.float32),
        "b_cls":   scale * jax.random.normal(ks[5], (1, FOLDS), jnp.float32),
    }


def reference_forward(x, params, *, patch):
    B = x.shape[0]
    P = (x.shape[2] // patch) * (x.shape[3] // patch)
    patches = patchify_nchw(x, patch).reshape(B * P, -1)            # bf16
    h = jnp.dot(patches, params["w_patch"].astype(jnp.bfloat16),
                preferred_element_type=jnp.float32)
    pooled = h.reshape(B, P, -1).mean(axis=1) + params["b_patch"]
    w_comb = params["w_head"] @ params["w_cls"]
    b_comb = params["b_head"] @ params["w_cls"] + params["b_cls"]
    logits = jnp.dot(pooled.astype(jnp.bfloat16), w_comb.astype(jnp.bfloat16),
                     preferred_element_type=jnp.float32) + b_comb
    return logits.T.reshape(FOLDS * B, 1)


if __name__ == "__main__":
    key = jax.random.PRNGKey(0)
    k_x, k_p = jax.random.split(key)

    B, C, HW, PATCH = 2, 3, 16, 4      # small RGB images, 4x4 patches -> 16 patches
    HIDDEN, EMBED = 32, 32             # scaled-down ViT hidden / head dims

    x = jax.random.normal(k_x, (B, C, HW, HW), jnp.float32)   # NCHW like PyTorch
    params = init_params(k_p, in_ch=C, patch=PATCH, hidden=HIDDEN, embed_dim=EMBED)

    out = inferer_forward(x, params, patch=PATCH)
    out = jax.block_until_ready(out)
    assert out.shape == (FOLDS * B, 1), out.shape

    ref = reference_forward(x, params, patch=PATCH)
    assert jnp.allclose(out, ref, atol=1e-3, rtol=1e-2), float(jnp.max(jnp.abs(out - ref)))

    print("KERNEL_OK")
</pallas_src>

<mosaic_0001>
module attributes {stable_mosaic.version = 11 : i64} {
  func.func @fused_inferer_kernel(%arg0: i32, %arg1: memref<1x128x128xbf16, #tpu.memory_space<vmem>>, %arg2: memref<128x128xbf16, #tpu.memory_space<vmem>>, %arg3: memref<1x128xf32, #tpu.memory_space<vmem>>, %arg4: memref<128x128xbf16, #tpu.memory_space<vmem>>, %arg5: memref<1x128xf32, #tpu.memory_space<vmem>>, %arg6: memref<1x8x128xf32, #tpu.memory_space<vmem>>) attributes {dimension_semantics = [#tpu.dimension_semantics<parallel>], iteration_bounds = array<i64: 1>, scalar_prefetch = 0 : i64, scratch_operands = 0 : i64, tpu.core_type = #tpu.core_type<tc>, window_params = [{transform_indices = @transform_0, window_bounds = array<i64: 1, 128, 128>}, {pipeline_mode = #tpu.pipeline_mode<synchronous>, transform_indices = @transform_1, window_bounds = array<i64: 128, 128>}, {pipeline_mode = #tpu.pipeline_mode<synchronous>, transform_indices = @transform_2, window_bounds = array<i64: 1, 128>}, {pipeline_mode = #tpu.pipeline_mode<synchronous>, transform_indices = @transform_3, window_bounds = array<i64: 128, 128>}, {pipeline_mode = #tpu.pipeline_mode<synchronous>, transform_indices = @transform_4, window_bounds = array<i64: 1, 128>}, {transform_indices = @transform_5, window_bounds = array<i64: 1, 8, 128>}]} {
    %c0 = arith.constant 0 : index
    %c0_0 = arith.constant 0 : index
    %c0_1 = arith.constant 0 : index
    %0 = vector.load %arg1[%c0, %c0_0, %c0_1] : memref<1x128x128xbf16, #tpu.memory_space<vmem>>, vector<1x128x128xbf16>
    %1 = vector.shape_cast %0 : vector<1x128x128xbf16> to vector<128x128xbf16>
    %c0_2 = arith.constant 0 : index
    %c0_3 = arith.constant 0 : index
    %2 = vector.load %arg2[%c0_2, %c0_3] : memref<128x128xbf16, #tpu.memory_space<vmem>>, vector<128x128xbf16>
    %cst = arith.constant dense<0.000000e+00> : vector<128x128xf32>
    %3 = tpu.matmul %1, %2, %cst {dimension_numbers = #tpu.dot_dimension_numbers<[1], [0], [0], [1], [0, 0, 1, 1], [], []>} : vector<128x128xbf16>, vector<128x128xbf16>, vector<128x128xf32> -> vector<128x128xf32>
    %4 = vector.shape_cast %3 : vector<128x128xf32> to vector<8x16x128xf32>
    %cst_4 = arith.constant dense<0.000000e+00> : vector<8x128xf32>
    %5 = vector.multi_reduction <add>, %4, %cst_4 [1] : vector<8x16x128xf32> to vector<8x128xf32>
    %cst_5 = arith.constant 6.250000e-02 : f32
    %6 = vector.broadcast %cst_5 : f32 to vector<8x128xf32>
    %7 = arith.mulf %5, %6 : vector<8x128xf32>
    %c0_6 = arith.constant 0 : index
    %c0_7 = arith.constant 0 : index
    %8 = vector.load %arg3[%c0_6, %c0_7] : memref<1x128xf32, #tpu.memory_space<vmem>>, vector<1x128xf32>
    %9 = vector.broadcast %8 : vector<1x128xf32> to vector<8x128xf32>
    %10 = arith.addf %7, %9 : vector<8x128xf32>
    %11 = arith.truncf %10 : vector<8x128xf32> to vector<8x128xbf16>
    %c0_8 = arith.constant 0 : index
    %c0_9 = arith.constant 0 : index
    %12 = vector.load %arg4[%c0_8, %c0_9] : memref<128x128xbf16, #tpu.memory_space<vmem>>, vector<128x128xbf16>
    %cst_10 = arith.constant dense<0.000000e+00> : vector<8x128xf32>
    %13 = tpu.matmul %11, %12, %cst_10 {dimension_numbers = #tpu.dot_dimension_numbers<[1], [0], [0], [1], [0, 0, 1, 1], [], []>} : vector<8x128xbf16>, vector<128x128xbf16>, vector<8x128xf32> -> vector<8x128xf32>
    %c0_11 = arith.constant 0 : index
    %c0_12 = arith.constant 0 : index
    %14 = vector.load %arg5[%c0_11, %c0_12] : memref<1x128xf32, #tpu.memory_space<vmem>>, vector<1x128xf32>
    %15 = vector.broadcast %14 : vector<1x128xf32> to vector<8x128xf32>
    %16 = arith.addf %13, %15 : vector<8x128xf32>
    %c0_13 = arith.constant 0 : index
    %c0_14 = arith.constant 0 : index
    %c0_15 = arith.constant 0 : index
    %17 = vector.load %arg6[%c0_13, %c0_14, %c0_15] : memref<1x8x128xf32, #tpu.memory_space<vmem>>, vector<1x8x128xf32>
    %18 = vector.shape_cast %17 : vector<1x8x128xf32> to vector<8x128xf32>
    %19 = vector.shape_cast %16 : vector<8x128xf32> to vector<1x8x128xf32>
    tpu.vector_store %arg6[%c0_13, %c0_14, %c0_15], %19 {strides = array<i32>} : memref<1x8x128xf32, #tpu.memory_space<vmem>>, vector<1x8x128xf32>,
    return
  }
  func.func @transform_0(%arg0: i32) -> (i32, i32, i32) {
    %c0_i32 = arith.constant 0 : i32
    %c0_i32_0 = arith.constant 0 : i32
    %c0_i32_1 = arith.constant 0 : i32
    return %arg0, %c0_i32, %c0_i32_0 : i32, i32, i32
  }
  func.func @transform_1(%arg0: i32) -> (i32, i32) {
    %c0_i32 = arith.constant 0 : i32
    %c0_i32_0 = arith.constant 0 : i32
    %c0_i32_1 = arith.constant 0 : i32
    return %c0_i32, %c0_i32_0 : i32, i32
  }
  func.func @transform_2(%arg0: i32) -> (i32, i32) {
    %c0_i32 = arith.constant 0 : i32
    %c0_i32_0 = arith.constant 0 : i32
    %c0_i32_1 = arith.constant 0 : i32
    return %c0_i32, %c0_i32_0 : i32, i32
  }
  func.func @transform_3(%arg0: i32) -> (i32, i32) {
    %c0_i32 = arith.constant 0 : i32
    %c0_i32_0 = arith.constant 0 : i32
    %c0_i32_1 = arith.constant 0 : i32
    return %c0_i32, %c0_i32_0 : i32, i32
  }
  func.func @transform_4(%arg0: i32) -> (i32, i32) {
    %c0_i32 = arith.constant 0 : i32
    %c0_i32_0 = arith.constant 0 : i32
    %c0_i32_1 = arith.constant 0 : i32
    return %c0_i32, %c0_i32_0 : i32, i32
  }
  func.func @transform_5(%arg0: i32) -> (i32, i32, i32) {
    %c0_i32 = arith.constant 0 : i32
    %c0_i32_0 = arith.constant 0 : i32
    %c0_i32_1 = arith.constant 0 : i32
    return %arg0, %c0_i32, %c0_i32_0 : i32, i32, i32
  }
}

module attributes {stable_mosaic.version = 11 : i64} {
  func.func @fused_inferer_kernel(%arg0: i32, %arg1: memref<1x128x128xbf16, #tpu.memory_space<vmem>>, %arg2: memref<128x128xbf16, #tpu.memory_space<vmem>>, %arg3: memref<1x128xf32, #tpu.memory_space<vmem>>, %arg4: memref<128x128xbf16, #tpu.memory_space<vmem>>, %arg5: memref<1x128xf32, #tpu.memory_space<vmem>>, %arg6: memref<1x8x128xf32, #tpu.memory_space<vmem>>) attributes {dimension_semantics = [#tpu.dimension_semantics<parallel>], iteration_bounds = array<i64: 1>, scalar_prefetch = 0 : i64, scratch_operands = 0 : i64, tpu.core_type = #tpu.core_type<tc>, window_params = [{transform_indices = @transform_0, window_bounds = array<i64: 1, 128, 128>}, {pipeline_mode = #tpu.pipeline_mode<synchronous>, transform_indices = @transform_1, window_bounds = array<i64: 128, 128>}, {pipeline_mode = #tpu.pipeline_mode<synchronous>, transform_indices = @transform_2, window_bounds = array<i64: 1, 128>}, {pipeline_mode = #tpu.pipeline_mode<synchronous>, transform_indices = @transform_3, window_bounds = array<i64: 128, 128>}, {pipeline_mode = #tpu.pipeline_mode<synchronous>, transform_indices = @transform_4, window_bounds = array<i64: 1, 128>}, {transform_indices = @transform_5, window_bounds = array<i64: 1, 8, 128>}]} {
    %c0 = arith.constant 0 : index
    %c0_0 = arith.constant 0 : index
    %c0_1 = arith.constant 0 : index
    %0 = vector.load %arg1[%c0, %c0_0, %c0_1] : memref<1x128x128xbf16, #tpu.memory_space<vmem>>, vector<1x128x128xbf16>
    %1 = vector.shape_cast %0 : vector<1x128x128xbf16> to vector<128x128xbf16>
    %c0_2 = arith.constant 0 : index
    %c0_3 = arith.constant 0 : index
    %2 = vector.load %arg2[%c0_2, %c0_3] : memref<128x128xbf16, #tpu.memory_space<vmem>>, vector<128x128xbf16>
    %cst = arith.constant dense<0.000000e+00> : vector<128x128xf32>
    %3 = tpu.matmul %1, %2, %cst {dimension_numbers = #tpu.dot_dimension_numbers<[1], [0], [0], [1], [0, 0, 1, 1], [], []>} : vector<128x128xbf16>, vector<128x128xbf16>, vector<128x128xf32> -> vector<128x128xf32>
    %4 = vector.shape_cast %3 : vector<128x128xf32> to vector<8x16x128xf32>
    %cst_4 = arith.constant dense<0.000000e+00> : vector<8x128xf32>
    %5 = vector.multi_reduction <add>, %4, %cst_4 [1] : vector<8x16x128xf32> to vector<8x128xf32>
    %cst_5 = arith.constant 6.250000e-02 : f32
    %6 = vector.broadcast %cst_5 : f32 to vector<8x128xf32>
    %7 = arith.mulf %5, %6 : vector<8x128xf32>
    %c0_6 = arith.constant 0 : index
    %c0_7 = arith.constant 0 : index
    %8 = vector.load %arg3[%c0_6, %c0_7] : memref<1x128xf32, #tpu.memory_space<vmem>>, vector<1x128xf32>
    %9 = vector.broadcast %8 : vector<1x128xf32> to vector<8x128xf32>
    %10 = arith.addf %7, %9 : vector<8x128xf32>
    %11 = arith.truncf %10 : vector<8x128xf32> to vector<8x128xbf16>
    %c0_8 = arith.constant 0 : index
    %c0_9 = arith.constant 0 : index
    %12 = vector.load %arg4[%c0_8, %c0_9] : memref<128x128xbf16, #tpu.memory_space<vmem>>, vector<128x128xbf16>
    %cst_10 = arith.constant dense<0.000000e+00> : vector<8x128xf32>
    %13 = tpu.matmul %11, %12, %cst_10 {dimension_numbers = #tpu.dot_dimension_numbers<[1], [0], [0], [1], [0, 0, 1, 1], [], []>} : vector<8x128xbf16>, vector<128x128xbf16>, vector<8x128xf32> -> vector<8x128xf32>
    %c0_11 = arith.constant 0 : index
    %c0_12 = arith.constant 0 : index
    %14 = vector.load %arg5[%c0_11, %c0_12] : memref<1x128xf32, #tpu.memory_space<vmem>>, vector<1x128xf32>
    %15 = vector.broadcast %14 : vector<1x128xf32> to vector<8x128xf32>
    %16 = arith.addf %13, %15 : vector<8x128xf32>
    %c0_13 = arith.constant 0 : index
    %c0_14 = arith.constant 0 : index
    %c0_15 = arith.constant 0 : index
    %17 = vector.load %arg6[%c0_13, %c0_14, %c0_15] : memref<1x8x128xf32, #tpu.memory_space<vmem>>, vector<1x8x128xf32>
    %18 = vector.shape_cast %17 : vector<1x8x128xf32> to vector<8x128xf32>
    %19 = vector.shape_cast %16 : vector<8x128xf32> to vector<1x8x128xf32>
    tpu.vector_store %arg6[%c0_13, %c0_14, %c0_15], %19 {strides = array<i32>} : memref<1x8x128xf32, #tpu.memory_space<vmem>>, vector<1x8x128xf32>,
    return
  }
  func.func @transform_0(%arg0: i32) -> (i32, i32, i32) {
    %c0_i32 = arith.constant 0 : i32
    %c0_i32_0 = arith.constant 0 : i32
    %c0_i32_1 = arith.constant 0 : i32
    return %arg0, %c0_i32, %c0_i32_0 : i32, i32, i32
  }
  func.func @transform_1(%arg0: i32) -> (i32, i32) {
    %c0_i32 = arith.constant 0 : i32
    %c0_i32_0 = arith.constant 0 : i32
    %c0_i32_1 = arith.constant 0 : i32
    return %c0_i32, %c0_i32_0 : i32, i32
  }
  func.func @transform_2(%arg0: i32) -> (i32, i32) {
    %c0_i32 = arith.constant 0 : i32
    %c0_i32_0 = arith.constant 0 : i32
    %c0_i32_1 = arith.constant 0 : i32
    return %c0_i32, %c0_i32_0 : i32, i32
  }
  func.func @transform_3(%arg0: i32) -> (i32, i32) {
    %c0_i32 = arith.constant 0 : i32
    %c0_i32_0 = arith.constant 0 : i32
    %c0_i32_1 = arith.constant 0 : i32
    return %c0_i32, %c0_i32_0 : i32, i32
  }
  func.func @transform_4(%arg0: i32) -> (i32, i32) {
    %c0_i32 = arith.constant 0 : i32
    %c0_i32_0 = arith.constant 0 : i32
    %c0_i32_1 = arith.constant 0 : i32
    return %c0_i32, %c0_i32_0 : i32, i32
  }
  func.func @transform_5(%arg0: i32) -> (i32, i32, i32) {
    %c0_i32 = arith.constant 0 : i32
    %c0_i32_0 = arith.constant 0 : i32
    %c0_i32_1 = arith.constant 0 : i32
    return %arg0, %c0_i32, %c0_i32_0 : i32, i32, i32
  }
}

</mosaic_0001>

<bundles_post_ra>
// kernel: tpu_custom_call.1
= control target key start
LH: loop header
LB: loop body
LE: loop exit
PB: predicated region body
PF: predicated region fallthrough
CT: control target
= control target key end

     0   :  { %10 = vsyncpa [#allocation3], 0  ;;  %s889_s0 = inlined_call_operand.hbm [shape: bf16[1,128,128], index: 0, kind: input, shape index: {}]   ;;  %s890_s1 = inlined_call_operand.hbm [shape: bf16[128,128], index: 1, kind: input, shape index: {}]   ;;  %s891_s2 = inlined_call_operand.vmem [shape: f32[1,128], index: 2, kind: input, shape index: {}]   ;;  %s892_s3 = inlined_call_operand.hbm [shape: bf16[128,128], index: 3, kind: input, shape index: {}]   ;;  %s893_s4 = inlined_call_operand.vmem [shape: f32[1,128], index: 4, kind: input, shape index: {}]   ;;  %s894_s5 = inlined_call_operand.hbm [shape: f32[1,8,128], index: 5, kind: output, shape index: {}]  }
   0x1   :  { %11 = vsyncpa [#allocation6], 0 }
   0x2   :  { %12 = vsyncpa [#allocation4], 0  ;;  %s771_s18 = smov [#allocation5]   ;;  %s772_s20 = smov [#allocation2]  }
   0x3   :  { %s30_s19 = sshll.u32 %s771_s18, 4  ;;  %s18_s21 = sshll.u32 %s772_s20, 4  ;;  %s31_s19 = int_to_ptr.vmem [resolvable:$true] %s30_s19  ;;  %s809_s21 = int_to_ptr.vmem [resolvable:$true] %s18_s21 }
   0x4   :  { %s677_s24 = scalar_lea.hbm %s890_s1, 1024 }
   0x5   :  { %p678_p0 = scmp.ne.s32.totalorder %s890_s1, %s677_s24  ;;  %p681_p1 = scmp.lt.u32.totalorder %s677_s24, %s890_s1 }
   0x7   :  { %p683_p2 = pnand %p681_p1, %p678_p0 }
   0x9   :  { %686 = shalt.err (!%p683_p2)
}
   0xa   :  { %s687_s29 = scalar_lea.vmem %s31_s19, 1024  ;;  %p692_p4 = scmp.lt.s32.totalorder %s31_s19, %s31_s19 }
   0xb   :  { %p688_p3 = scmp.ne.s32.totalorder %s31_s19, %s687_s29  ;;  %p693_p5 = scmp.lt.s32.totalorder %s687_s29, %s687_s29 }
   0xd   :  { %p694_p6 = por %p693_p5, %p692_p4 }
   0xf   :  { %p695_p7 = pnand %p694_p6, %p688_p3 }
  0x11   :  { %698 = shalt.err (!%p695_p7)
}
  0x12   :  { %s773_s30 = smov 64   ;;  %s774_s6 = smov 4  }
  0x13   :  { %36 = dma.hbm_to_vmem [thread:$0]  %s890_s1, 1024, %s31_s19, [#allocation6], %s773_s30, %s773_s30, %s774_s6  }
  0x14   :  { %s699_s11 = scalar_lea.hbm %s889_s0, 1024 }
  0x15   :  { %p700_p8 = scmp.ne.s32.totalorder %s889_s0, %s699_s11  ;;  %p703_p9 = scmp.lt.u32.totalorder %s699_s11, %s889_s0 }
  0x17   :  { %p705_p10 = pnand %p703_p9, %p700_p8 }
  0x19   :  { %708 = shalt.err (!%p705_p10)
}
  0x1a   :  { %s709_s16 = scalar_lea.vmem %s809_s21, 1024  ;;  %p714_p12 = scmp.lt.s32.totalorder %s809_s21, %s809_s21 }
  0x1b   :  { %p710_p11 = scmp.ne.s32.totalorder %s809_s21, %s709_s16  ;;  %p715_p13 = scmp.lt.s32.totalorder %s709_s16, %s709_s16 }
  0x1d   :  { %p716_p0 = por %p715_p13, %p714_p12 }
  0x1f   :  { %p717_p1 = pnand %p716_p0, %p710_p11 }
  0x21   :  { %720 = shalt.err (!%p717_p1)
}
  0x22   :  { %24 = dma.hbm_to_vmem [thread:$0]  %s889_s0, 1024, %s809_s21, [#allocation3], %s773_s30, %s773_s30, %s774_s6  }
  0x23   :  { %s775_s18 = smov [#allocation7]   ;;  %s721_s23 = scalar_lea.hbm %s892_s3, 1024 }
  0x24   :  { %s44_s19 = sshll.u32 %s775_s18, 4  ;;  %p722_p2 = scmp.ne.s32.totalorder %s892_s3, %s721_s23  ;;  %s45_s19 = int_to_ptr.vmem [resolvable:$true] %s44_s19 }
  0x25   :  { %p725_p3 = scmp.lt.u32.totalorder %s721_s23, %s892_s3 }
  0x27   :  { %p727_p4 = pnand %p725_p3, %p722_p2 }
  0x29   :  { %730 = shalt.err (!%p727_p4)
}
  0x2a   :  { %s731_s28 = scalar_lea.vmem %s45_s19, 1024  ;;  %p736_p6 = scmp.lt.s32.totalorder %s45_s19, %s45_s19 }
  0x2b   :  { %p732_p5 = scmp.ne.s32.totalorder %s45_s19, %s731_s28  ;;  %p737_p7 = scmp.lt.s32.totalorder %s731_s28, %s731_s28 }
  0x2d   :  { %p738_p8 = por %p737_p7, %p736_p6 }
  0x2f   :  { %p739_p9 = pnand %p738_p8, %p732_p5 }
  0x31   :  { %742 = shalt.err (!%p739_p9)
}
  0x32   :  { %50 = dma.hbm_to_vmem [thread:$0]  %s892_s3, 1024, %s45_s19, [#allocation6], %s773_s30, %s773_s30, %s774_s6  }
  0x33   :  { %765 = dma.done.wait [#allocation3], 1024  }
  0x34   :  { %766 = vsyncadd [#allocation3], 4294966272 }
  0x35   :  { %767 = dma.done.wait [#allocation6], 2048  }
  0x36   :  { %768 = vsyncadd [#allocation6], 4294965248  ;;  %v653_v0 = vld [vmem:[#allocation5] sm:$0xff]   ;;  %v654_v1 = vld [vmem:[#allocation5 + $0x8] sm:$0xff]   ;;  %v776_v17 = vmov 0.0   ;;  %vm777_vm0 = vmmov 0  }
  0x37   :  { %593 = vmatprep.subr.bf16.mxu0 %v653_v0  ;;  %v655_v2 = vld [vmem:[#allocation5 + $0x10] sm:$0xff]   ;;  %v656_v3 = vld [vmem:[#allocation5 + $0x18] sm:$0xff]   ;;  %v661_v4 = vld [vmem:[#allocation2] sm:$0xff]   ;;  %625 = vmatprep.subr.bf16.mxu1 %v776_v17  ;;  %vm415_vm1 = vcmask 1041409   ;;  %vm418_vm2 = vcmask 1042434   ;;  %vm421_vm3 = vcmask 1043459  }
  0x38   :  { %594 = vmatpush3.bf16.msra.mxu0 %v653_v0  ;;  %609 = vmatprep.mubr.bf16.mxu0 %v661_v4  ;;  %v657_v5 = vld [vmem:[#allocation5 + $0x20] sm:$0xff]   ;;  %v658_v6 = vld [vmem:[#allocation5 + $0x28] sm:$0xff]   ;;  %v659_v7 = vld [vmem:[#allocation5 + $0x30] sm:$0xff]   ;;  %vm424_vm4 = vcmask 1044484   ;;  %vm427_vm5 = vcmask 1045509   ;;  %vm430_vm6 = vcmask 1046534  }
  0x39   :  { %595 = vmatprep.subr.bf16.mxu0 %v654_v1  ;;  %v660_v8 = vld [vmem:[#allocation5 + $0x38] sm:$0xff]   ;;  %v662_v9 = vld [vmem:[#allocation2 + $0x8] sm:$0xff]   ;;  %v663_v10 = vld [vmem:[#allocation2 + $0x10] sm:$0xff]   ;;  %641 = vmatprep.mubr.msk.bf16.mxu1 %vm777_vm0, %v776_v17  ;;  %vm433_vm7 = vcmask 1047559   ;;  %s778_s6 = smov [#allocation8]  }
  0x3a   :  { %v664_v11 = vld [vmem:[#allocation2 + $0x18] sm:$0xff]   ;;  %v665_v12 = vld [vmem:[#allocation2 + $0x20] sm:$0xff]   ;;  %v666_v13 = vld [vmem:[#allocation2 + $0x28] sm:$0xff]   ;;  %s532_s7 = sshll.u32 %s778_s6, 4  ;;  %s533_s7 = int_to_ptr.vmem [resolvable:$true] %s532_s7 }
  0x3b   :  { %v667_v14 = vld [vmem:[#allocation2 + $0x30] sm:$0xff]   ;;  %v668_v15 = vld [vmem:[#allocation2 + $0x38] sm:$0xff]   ;;  %v669_v16 = vld [vmem:[#allocation7] sm:$0xff]   ;;  %s743_s8 = scalar_lea.vmem %s533_s7, 128  ;;  %p748_p11 = scmp.lt.s32.totalorder %s533_s7, %s533_s7 }
  0x3c   :  { %596 = vmatpush3.bf16.msra.mxu0 %v654_v1  ;;  %626 = vmatpush3.bf16.msra.mxu1 %v669_v16  ;;  %v670_v18 = vld [vmem:[#allocation7 + $0x8] sm:$0xff]   ;;  %v671_v19 = vld [vmem:[#allocation7 + $0x10] sm:$0xff]   ;;  %v672_v20 = vld [vmem:[#allocation7 + $0x18] sm:$0xff]   ;;  %p744_p10 = scmp.ne.s32.totalorder %s533_s7, %s743_s8  ;;  %p749_p12 = scmp.lt.s32.totalorder %s743_s8, %s743_s8 }
  0x3d   :  { %597 = vmatprep.subr.bf16.mxu0 %v655_v2  ;;  %627 = vmatprep.subr.bf16.mxu1 %v776_v17  ;;  %v673_v21 = vld [vmem:[#allocation7 + $0x20] sm:$0xff]   ;;  %v674_v22 = vld [vmem:[#allocation7 + $0x28] sm:$0xff]   ;;  %v675_v23 = vld [vmem:[#allocation7 + $0x30] sm:$0xff]  }
  0x3e   :  { %v676_v24 = vld [vmem:[#allocation7 + $0x38] sm:$0xff]   ;;  %v864_v51 = vld [vmem:[%s891_s2] ss:$0 sm:$0xff]  ;;  %p750_p13 = por %p749_p12, %p748_p11 }
  0x40   :  { %598 = vmatpush3.bf16.msra.mxu0 %v655_v2  ;;  %628 = vmatpush3.bf16.msra.mxu1 %v670_v18  ;;  %p751_p0 = pnand %p750_p13, %p744_p10 }
  0x41   :  { %599 = vmatprep.subr.bf16.mxu0 %v656_v3  ;;  %629 = vmatprep.subr.bf16.mxu1 %v776_v17 }
  0x44   :  { %600 = vmatpush3.bf16.msra.mxu0 %v656_v3  ;;  %630 = vmatpush3.bf16.msra.mxu1 %v671_v19 }
  0x45   :  { %601 = vmatprep.subr.bf16.mxu0 %v657_v5  ;;  %631 = vmatprep.subr.bf16.mxu1 %v776_v17 }
  0x48   :  { %602 = vmatpush3.bf16.msra.mxu0 %v657_v5  ;;  %632 = vmatpush3.bf16.msra.mxu1 %v672_v20 }
  0x49   :  { %603 = vmatprep.subr.bf16.mxu0 %v658_v6  ;;  %633 = vmatprep.subr.bf16.mxu1 %v776_v17 }
  0x4c   :  { %604 = vmatpush3.bf16.msra.mxu0 %v658_v6  ;;  %634 = vmatpush3.bf16.msra.mxu1 %v673_v21 }
  0x4d   :  { %605 = vmatprep.subr.bf16.mxu0 %v659_v7  ;;  %635 = vmatprep.subr.bf16.mxu1 %v776_v17 }
  0x50   :  { %606 = vmatpush3.bf16.msra.mxu0 %v659_v7  ;;  %636 = vmatpush3.bf16.msra.mxu1 %v674_v22 }
  0x51   :  { %607 = vmatprep.subr.bf16.mxu0 %v660_v8  ;;  %637 = vmatprep.subr.bf16.mxu1 %v776_v17 }
  0x54   :  { %608 = vmatpush3.bf16.msra.mxu0 %v660_v8  ;;  %638 = vmatpush3.bf16.msra.mxu1 %v675_v23 }
  0x55   :  { %639 = vmatprep.subr.bf16.mxu1 %v776_v17 }
  0x57   :  { %610 = vmatmul.mubr.bf16.vlgmr.msra.gmra.mrb[0].mxu0 %v662_v9 }
  0x58   :  { %613 = vmatprep.mubr.bf16.mxu0 %v663_v10  ;;  %640 = vmatpush3.bf16.msra.mxu1 %v676_v24 }
  0x5f   :  { %614 = vmatmul.mubr.bf16.gmra.mrb[4].mxu0 %v664_v11 }
  0x60   :  { %617 = vmatprep.mubr.bf16.mxu0 %v665_v12 }
  0x67   :  { %618 = vmatmul.mubr.bf16.gmra.mrb[8].mxu0 %v666_v13 }
  0x68   :  { %621 = vmatprep.mubr.bf16.mxu0 %v667_v14 }
  0x6f   :  { %622 = vmatmul.mubr.bf16.gmra.mrb[12].mxu0 %v668_v15 }
 0x12a   :  { %v611_v25 = vpop.f32.mrb[0].mxu0 }
 0x12b   :  { %v225_v26 = vpop.f32.mrb[1].mxu0 }
 0x12c   :  { %v612_v27 = vpop.f32.mrb[2].mxu0 }
 0x12d   :  { %v295_v28 = vadd.f32 %v612_v27, %v611_v25  ;;  %v228_v29 = vpop.f32.mrb[3].mxu0 }
 0x12e   :  { %v288_v30 = vadd.f32 %v228_v29, %v225_v26 }
 0x12f   :  { %v296_v31 = vrot.slane %v295_v28, 4 }
 0x130   :  { %v289_v32 = vrot.slane %v288_v30, 4 }
 0x131   :  { %v297_v33 = vadd.f32 %v296_v31, %v295_v28 }
 0x132   :  { %v290_v34 = vadd.f32 %v289_v32, %v288_v30  ;;  %v615_v35 = vpop.f32.mrb[4].mxu0 }
 0x133   :  { %v298_v36 = vrot.slane %v297_v33, 2  ;;  %v241_v37 = vpop.f32.mrb[5].mxu0 }
 0x134   :  { %v291_v38 = vrot.slane %v290_v34, 2  ;;  %v616_v39 = vpop.f32.mrb[6].mxu0 }
 0x135   :  { %v299_v40 = vadd.f32 %v298_v36, %v297_v33  ;;  %v309_v41 = vadd.f32 %v616_v39, %v615_v35  ;;  %v244_v42 = vpop.f32.mrb[7].mxu0 }
 0x136   :  { %v292_v43 = vadd.f32 %v291_v38, %v290_v34  ;;  %v302_v44 = vadd.f32 %v244_v42, %v241_v37 }
 0x137   :  { %v300_v45 = vrot.slane %v299_v40, 1  ;;  %v310_v46 = vrot.slane %v309_v41, 4 }
 0x138   :  { %v293_v47 = vrot.slane %v292_v43, 1  ;;  %v303_v48 = vrot.slane %v302_v44, 4 }
 0x139   :  { %v301_v49 = vadd.f32 %v300_v45, %v299_v40  ;;  %v311_v50 = vadd.f32 %v310_v46, %v309_v41 }
 0x13a   :  { %v294_v52 = vadd.f32 %v293_v47, %v292_v43  ;;  %v304_v53 = vadd.f32 %v303_v48, %v302_v44  ;;  %v619_v54 = vpop.f32.mrb[8].mxu0 }
 0x13b   :  { %v345_v55 = vmul.f32 0.0625, %v301_v49  ;;  %v312_v56 = vrot.slane %v311_v50, 2  ;;  %v257_v57 = vpop.f32.mrb[9].mxu0 }
 0x13c   :  { %v344_v58 = vmul.f32 0.0625, %v294_v52  ;;  %v305_v59 = vrot.slane %v304_v53, 2  ;;  %v620_v60 = vpop.f32.mrb[10].mxu0 }
 0x13d   :  { %v360_v61 = vadd.f32 %v864_v51, %v345_v55  ;;  %v313_v62 = vadd.f32 %v312_v56, %v311_v50  ;;  %v323_v63 = vadd.f32 %v620_v60, %v619_v54  ;;  %v260_v0 = vpop.f32.mrb[11].mxu0 }
 0x13e   :  { %v359_v1 = vadd.f32 %v864_v51, %v344_v58  ;;  %v306_v2 = vadd.f32 %v305_v59, %v304_v53  ;;  %v316_v3 = vadd.f32 %v260_v0, %v257_v57 }
 0x13f   :  { %v368_v4 = vpack.c.bf16 %v360_v61, %v360_v61  ;;  %v314_v5 = vrot.slane %v313_v62, 1  ;;  %v324_v6 = vrot.slane %v323_v63, 4 }
 0x140   :  { %v367_v7 = vpack.c.bf16 %v359_v1, %v359_v1  ;;  %v307_v8 = vrot.slane %v306_v2, 1  ;;  %v317_v9 = vrot.slane %v316_v3, 4 }
 0x141   :  { %v407_v10 = vunpack.c.l.b16 %v368_v4  ;;  %v315_v11 = vadd.f32 %v314_v5, %v313_v62  ;;  %v325_v12 = vadd.f32 %v324_v6, %v323_v63 }
 0x142   :  { %v406_v13 = vunpack.c.l.b16 %v367_v7  ;;  %v308_v14 = vadd.f32 %v307_v8, %v306_v2  ;;  %v318_v15 = vadd.f32 %v317_v9, %v316_v3  ;;  %v623_v16 = vpop.f32.mrb[12].mxu0 }
 0x143   :  { %v414_v17 = vrot.slane %v407_v10, 7  ;;  %v347_v18 = vmul.f32 0.0625, %v315_v11  ;;  %v326_v19 = vrot.slane %v325_v12, 2  ;;  %v273_v20 = vpop.f32.mrb[13].mxu0 }
 0x144   :  { %v346_v21 = vmul.f32 0.0625, %v308_v14  ;;  %v319_v22 = vrot.slane %v318_v15, 2  ;;  %v624_v23 = vpop.f32.mrb[14].mxu0 }
 0x145   :  { %v416_v24 = vsel %vm415_vm1, %v414_v17, %v406_v13  ;;  %v362_v25 = vadd.f32 %v864_v51, %v347_v18  ;;  %v327_v26 = vadd.f32 %v326_v19, %v325_v12  ;;  %v337_v27 = vadd.f32 %v624_v23, %v623_v16  ;;  %v276_v28 = vpop.f32.mrb[15].mxu0  ;;  %v559_v18 = vld [vmem:[%s893_s4] ss:$0 sm:$0xff] }
 0x146   :  { %v361_v29 = vadd.f32 %v864_v51, %v346_v21  ;;  %v320_v30 = vadd.f32 %v319_v22, %v318_v15  ;;  %v330_v31 = vadd.f32 %v276_v28, %v273_v20 }
 0x147   :  { %v370_v32 = vpack.c.bf16 %v362_v25, %v362_v25  ;;  %v328_v33 = vrot.slane %v327_v26, 1  ;;  %v338_v34 = vrot.slane %v337_v27, 4 }
 0x148   :  { %v369_v35 = vpack.c.bf16 %v361_v29, %v361_v29  ;;  %v321_v36 = vrot.slane %v320_v30, 1  ;;  %v331_v37 = vrot.slane %v330_v31, 4 }
 0x149   :  { %v409_v38 = vunpack.c.l.b16 %v370_v32  ;;  %v329_v39 = vadd.f32 %v328_v33, %v327_v26  ;;  %v339_v40 = vadd.f32 %v338_v34, %v337_v27 }
 0x14a   :  { %v408_v41 = vunpack.c.l.b16 %v369_v35  ;;  %v322_v42 = vadd.f32 %v321_v36, %v320_v30  ;;  %v332_v43 = vadd.f32 %v331_v37, %v330_v31 }
 0x14b   :  { %v349_v44 = vmul.f32 0.0625, %v329_v39  ;;  %v340_v45 = vrot.slane %v339_v40, 2  ;;  %v420_v49 = vrot.slane %v409_v38, 5 }
 0x14c   :  { %v417_v46 = vrot.slane %v408_v41, 6  ;;  %v348_v47 = vmul.f32 0.0625, %v322_v42  ;;  %v333_v48 = vrot.slane %v332_v43, 2 }
 0x14d   :  { %v364_v50 = vadd.f32 %v864_v51, %v349_v44  ;;  %v341_v52 = vadd.f32 %v340_v45, %v339_v40 }
 0x14e   :  { %v419_v53 = vsel %vm418_vm2, %v417_v46, %v416_v24  ;;  %v363_v54 = vadd.f32 %v864_v51, %v348_v47  ;;  %v334_v55 = vadd.f32 %v333_v48, %v332_v43 }
 0x14f   :  { %v372_v56 = vpack.c.bf16 %v364_v50, %v364_v50  ;;  %v342_v57 = vrot.slane %v341_v52, 1  ;;  %v422_v58 = vsel %vm421_vm3, %v420_v49, %v419_v53 }
 0x150   :  { %v371_v59 = vpack.c.bf16 %v363_v54, %v363_v54  ;;  %v335_v60 = vrot.slane %v334_v55, 1 }
 0x151   :  { %v411_v61 = vunpack.c.l.b16 %v372_v56  ;;  %v343_v62 = vadd.f32 %v342_v57, %v341_v52 }
 0x152   :  { %v410_v63 = vunpack.c.l.b16 %v371_v59  ;;  %v336_v0 = vadd.f32 %v335_v60, %v334_v55 }
 0x153   :  { %v351_v1 = vmul.f32 0.0625, %v343_v62  ;;  %v426_v4 = vrot.slane %v411_v61, 3 }
 0x154   :  { %v423_v2 = vrot.slane %v410_v63, 4  ;;  %v350_v3 = vmul.f32 0.0625, %v336_v0 }
 0x155   :  { %v366_v5 = vadd.f32 %v864_v51, %v351_v1 }
 0x156   :  { %v365_v6 = vadd.f32 %v864_v51, %v350_v3  ;;  %v425_v7 = vsel %vm424_vm4, %v423_v2, %v422_v58 }
 0x157   :  { %v374_v8 = vpack.c.bf16 %v366_v5, %v366_v5  ;;  %v428_v9 = vsel %vm427_vm5, %v426_v4, %v425_v7 }
 0x158   :  { %v373_v10 = vpack.c.bf16 %v365_v6, %v365_v6 }
 0x159   :  { %v413_v11 = vunpack.c.l.b16 %v374_v8 }
 0x15a   :  { %v412_v12 = vunpack.c.l.b16 %v373_v10 }
 0x15b   :  { %v432_v14 = vrot.slane %v413_v11, 1 }
 0x15c   :  { %v429_v13 = vrot.slane %v412_v12, 2 }
 0x15e   :  { %v431_v15 = vsel %vm430_vm6, %v429_v13, %v428_v9 }
 0x15f   :  { %v434_v16 = vsel %vm433_vm7, %v432_v14, %v431_v15 }
 0x160   :  { %v435_v17 = vpack.c.b16 %v434_v16, %v434_v16 }
 0x162   :  { %642 = vmatmul.mubr.bf16.vlgmr.msra.gmra.mrb[0].mxu1 %v435_v17 }
 0x235   :  { %v519_v51 = vpop.f32.mrb[0].mxu1 }
 0x236   :  { %v520_v19 = vadd.f32 %v559_v18, %v519_v51  ;;  %v643_v20 = vpop.f32.mrb[1].mxu1 }
 0x237   :  { %v522_v21 = vpop.f32.mrb[2].mxu1 }
 0x238   :  { %525 = vst [vmem:[#allocation8] sm:$0xff] %v520_v19  ;;  %v644_v22 = vpop.f32.mrb[3].mxu1 }
 0x239   :  { %754 = shalt.err (!%p751_p0)
}
 0x23a   :  { %s755_s4 = scalar_lea.hbm %s894_s5, 128 }
 0x23b   :  { %p756_p1 = scmp.ne.s32.totalorder %s894_s5, %s755_s4  ;;  %p759_p2 = scmp.lt.u32.totalorder %s755_s4, %s894_s5 }
 0x23d   :  { %p761_p3 = pnand %p759_p2, %p756_p1 }
 0x23f   :  { %764 = shalt.err (!%p761_p3)
}
 0x240   :  { %535 = dma.vmem_to_hbm [thread:$0]  %s533_s7, 128, %s894_s5, [#allocation4]  }
 0x241   :  { %769 = dma.done.wait [#allocation4], 128  }
 0x242   :  { %770 = vsyncadd [#allocation4], 4294967168 }
 0x243   :  { %539 = vsyncpa [#allocation3], 1 }
 0x244   :  { %540 = vsyncpa [#allocation6], 1 }
 0x245   :  { %541 = vsyncpa [#allocation4], 1 }

// kernel: tpu_custom_call.1
= control target key start
LH: loop header
LB: loop body
LE: loop exit
PB: predicated region body
PF: predicated region fallthrough
CT: control target
= control target key end

     0   :  { %10 = vsyncpa [#allocation3], 0  ;;  %s889_s0 = inlined_call_operand.hbm [shape: bf16[1,128,128], index: 0, kind: input, shape index: {}]   ;;  %s890_s1 = inlined_call_operand.hbm [shape: bf16[128,128], index: 1, kind: input, shape index: {}]   ;;  %s891_s2 = inlined_call_operand.vmem [shape: f32[1,128], index: 2, kind: input, shape index: {}]   ;;  %s892_s3 = inlined_call_operand.hbm [shape: bf16[128,128], index: 3, kind: input, shape index: {}]   ;;  %s893_s4 = inlined_call_operand.vmem [shape: f32[1,128], index: 4, kind: input, shape index: {}]   ;;  %s894_s5 = inlined_call_operand.hbm [shape: f32[1,8,128], index: 5, kind: output, shape index: {}]  }
   0x1   :  { %11 = vsyncpa [#allocation6], 0 }
   0x2   :  { %12 = vsyncpa [#allocation4], 0  ;;  %s771_s18 = smov [#allocation5]   ;;  %s772_s20 = smov [#allocation2]  }
   0x3   :  { %s30_s19 = sshll.u32 %s771_s18, 4  ;;  %s18_s21 = sshll.u32 %s772_s20, 4  ;;  %s31_s19 = int_to_ptr.vmem [resolvable:$true] %s30_s19  ;;  %s809_s21 = int_to_ptr.vmem [resolvable:$true] %s18_s21 }
   0x4   :  { %s677_s24 = scalar_lea.hbm %s890_s1, 1024 }
   0x5   :  { %p678_p0 = scmp.ne.s32.totalorder %s890_s1, %s677_s24  ;;  %p681_p1 = scmp.lt.u32.totalorder %s677_s24, %s890_s1 }
   0x7   :  { %p683_p2 = pnand %p681_p1, %p678_p0 }
   0x9   :  { %686 = shalt.err (!%p683_p2)
}
   0xa   :  { %s687_s29 = scalar_lea.vmem %s31_s19, 1024  ;;  %p692_p4 = scmp.lt.s32.totalorder %s31_s19, %s31_s19 }
   0xb   :  { %p688_p3 = scmp.ne.s32.totalorder %s31_s19, %s687_s29  ;;  %p693_p5 = scmp.lt.s32.totalorder %s687_s29, %s687_s29 }
   0xd   :  { %p694_p6 = por %p693_p5, %p692_p4 }
   0xf   :  { %p695_p7 = pnand %p694_p6, %p688_p3 }
  0x11   :  { %698 = shalt.err (!%p695_p7)
}
  0x12   :  { %s773_s30 = smov 64   ;;  %s774_s6 = smov 4  }
  0x13   :  { %36 = dma.hbm_to_vmem [thread:$0]  %s890_s1, 1024, %s31_s19, [#allocation6], %s773_s30, %s773_s30, %s774_s6  }
  0x14   :  { %s699_s11 = scalar_lea.hbm %s889_s0, 1024 }
  0x15   :  { %p700_p8 = scmp.ne.s32.totalorder %s889_s0, %s699_s11  ;;  %p703_p9 = scmp.lt.u32.totalorder %s699_s11, %s889_s0 }
  0x17   :  { %p705_p10 = pnand %p703_p9, %p700_p8 }
  0x19   :  { %708 = shalt.err (!%p705_p10)
}
  0x1a   :  { %s709_s16 = scalar_lea.vmem %s809_s21, 1024  ;;  %p714_p12 = scmp.lt.s32.totalorder %s809_s21, %s809_s21 }
  0x1b   :  { %p710_p11 = scmp.ne.s32.totalorder %s809_s21, %s709_s16  ;;  %p715_p13 = scmp.lt.s32.totalorder %s709_s16, %s709_s16 }
  0x1d   :  { %p716_p0 = por %p715_p13, %p714_p12 }
  0x1f   :  { %p717_p1 = pnand %p716_p0, %p710_p11 }
  0x21   :  { %720 = shalt.err (!%p717_p1)
}
  0x22   :  { %24 = dma.hbm_to_vmem [thread:$0]  %s889_s0, 1024, %s809_s21, [#allocation3], %s773_s30, %s773_s30, %s774_s6  }
  0x23   :  { %s775_s18 = smov [#allocation7]   ;;  %s721_s23 = scalar_lea.hbm %s892_s3, 1024 }
  0x24   :  { %s44_s19 = sshll.u32 %s775_s18, 4  ;;  %p722_p2 = scmp.ne.s32.totalorder %s892_s3, %s721_s23  ;;  %s45_s19 = int_to_ptr.vmem [resolvable:$true] %s44_s19 }
  0x25   :  { %p725_p3 = scmp.lt.u32.totalorder %s721_s23, %s892_s3 }
  0x27   :  { %p727_p4 = pnand %p725_p3, %p722_p2 }
  0x29   :  { %730 = shalt.err (!%p727_p4)
}
  0x2a   :  { %s731_s28 = scalar_lea.vmem %s45_s19, 1024  ;;  %p736_p6 = scmp.lt.s32.totalorder %s45_s19, %s45_s19 }
  0x2b   :  { %p732_p5 = scmp.ne.s32.totalorder %s45_s19, %s731_s28  ;;  %p737_p7 = scmp.lt.s32.totalorder %s731_s28, %s731_s28 }
  0x2d   :  { %p738_p8 = por %p737_p7, %p736_p6 }
  0x2f   :  { %p739_p9 = pnand %p738_p8, %p732_p5 }
  0x31   :  { %742 = shalt.err (!%p739_p9)
}
  0x32   :  { %50 = dma.hbm_to_vmem [thread:$0]  %s892_s3, 1024, %s45_s19, [#allocation6], %s773_s30, %s773_s30, %s774_s6  }
  0x33   :  { %765 = dma.done.wait [#allocation3], 1024  }
  0x34   :  { %766 = vsyncadd [#allocation3], 4294966272 }
  0x35   :  { %767 = dma.done.wait [#allocation6], 2048  }
  0x36   :  { %768 = vsyncadd [#allocation6], 4294965248  ;;  %v653_v0 = vld [vmem:[#allocation5] sm:$0xff]   ;;  %v654_v1 = vld [vmem:[#allocation5 + $0x8] sm:$0xff]   ;;  %v776_v17 = vmov 0.0   ;;  %vm777_vm0 = vmmov 0  }
  0x37   :  { %593 = vmatprep.subr.bf16.mxu0 %v653_v0  ;;  %v655_v2 = vld [vmem:[#allocation5 + $0x10] sm:$0xff]   ;;  %v656_v3 = vld [vmem:[#allocation5 + $0x18] sm:$0xff]   ;;  %v661_v4 = vld [vmem:[#allocation2] sm:$0xff]   ;;  %625 = vmatprep.subr.bf16.mxu1 %v776_v17  ;;  %vm415_vm1 = vcmask 1041409   ;;  %vm418_vm2 = vcmask 1042434   ;;  %vm421_vm3 = vcmask 1043459  }
  0x38   :  { %594 = vmatpush3.bf16.msra.mxu0 %v653_v0  ;;  %609 = vmatprep.mubr.bf16.mxu0 %v661_v4  ;;  %v657_v5 = vld [vmem:[#allocation5 + $0x20] sm:$0xff]   ;;  %v658_v6 = vld [vmem:[#allocation5 + $0x28] sm:$0xff]   ;;  %v659_v7 = vld [vmem:[#allocation5 + $0x30] sm:$0xff]   ;;  %vm424_vm4 = vcmask 1044484   ;;  %vm427_vm5 = vcmask 1045509   ;;  %vm430_vm6 = vcmask 1046534  }
  0x39   :  { %595 = vmatprep.subr.bf16.mxu0 %v654_v1  ;;  %v660_v8 = vld [vmem:[#allocation5 + $0x38] sm:$0xff]   ;;  %v662_v9 = vld [vmem:[#allocation2 + $0x8] sm:$0xff]   ;;  %v663_v10 = vld [vmem:[#allocation2 + $0x10] sm:$0xff]   ;;  %641 = vmatprep.mubr.msk.bf16.mxu1 %vm777_vm0, %v776_v17  ;;  %vm433_vm7 = vcmask 1047559   ;;  %s778_s6 = smov [#allocation8]  }
  0x3a   :  { %v664_v11 = vld [vmem:[#allocation2 + $0x18] sm:$0xff]   ;;  %v665_v12 = vld [vmem:[#allocation2 + $0x20] sm:$0xff]   ;;  %v666_v13 = vld [vmem:[#allocation2 + $0x28] sm:$0xff]   ;;  %s532_s7 = sshll.u32 %s778_s6, 4  ;;  %s533_s7 = int_to_ptr.vmem [resolvable:$true] %s532_s7 }
  0x3b   :  { %v667_v14 = vld [vmem:[#allocation2 + $0x30] sm:$0xff]   ;;  %v668_v15 = vld [vmem:[#allocation2 + $0x38] sm:$0xff]   ;;  %v669_v16 = vld [vmem:[#allocation7] sm:$0xff]   ;;  %s743_s8 = scalar_lea.vmem %s533_s7, 128  ;;  %p748_p11 = scmp.lt.s32.totalorder %s533_s7, %s533_s7 }
  0x3c   :  { %596 = vmatpush3.bf16.msra.mxu0 %v654_v1  ;;  %626 = vmatpush3.bf16.msra.mxu1 %v669_v16  ;;  %v670_v18 = vld [vmem:[#allocation7 + $0x8] sm:$0xff]   ;;  %v671_v19 = vld [vmem:[#allocation7 + $0x10] sm:$0xff]   ;;  %v672_v20 = vld [vmem:[#allocation7 + $0x18] sm:$0xff]   ;;  %p744_p10 = scmp.ne.s32.totalorder %s533_s7, %s743_s8  ;;  %p749_p12 = scmp.lt.s32.totalorder %s743_s8, %s743_s8 }
  0x3d   :  { %597 = vmatprep.subr.bf16.mxu0 %v655_v2  ;;  %627 = vmatprep.subr.bf16.mxu1 %v776_v17  ;;  %v673_v21 = vld [vmem:[#allocation7 + $0x20] sm:$0xff]   ;;  %v674_v22 = vld [vmem:[#allocation7 + $0x28] sm:$0xff]   ;;  %v675_v23 = vld [vmem:[#allocation7 + $0x30] sm:$0xff]  }
  0x3e   :  { %v676_v24 = vld [vmem:[#allocation7 + $0x38] sm:$0xff]   ;;  %v864_v51 = vld [vmem:[%s891_s2] ss:$0 sm:$0xff]  ;;  %p750_p13 = por %p749_p12, %p748_p11 }
  0x40   :  { %598 = vmatpush3.bf16.msra.mxu0 %v655_v2  ;;  %628 = vmatpush3.bf16.msra.mxu1 %v670_v18  ;;  %p751_p0 = pnand %p750_p13, %p744_p10 }
  0x41   :  { %599 = vmatprep.subr.bf16.mxu0 %v656_v3  ;;  %629 = vmatprep.subr.bf16.mxu1 %v776_v17 }
  0x44   :  { %600 = vmatpush3.bf16.msra.mxu0 %v656_v3  ;;  %630 = vmatpush3.bf16.msra.mxu1 %v671_v19 }
  0x45   :  { %601 = vmatprep.subr.bf16.mxu0 %v657_v5  ;;  %631 = vmatprep.subr.bf16.mxu1 %v776_v17 }
  0x48   :  { %602 = vmatpush3.bf16.msra.mxu0 %v657_v5  ;;  %632 = vmatpush3.bf16.msra.mxu1 %v672_v20 }
  0x49   :  { %603 = vmatprep.subr.bf16.mxu0 %v658_v6  ;;  %633 = vmatprep.subr.bf16.mxu1 %v776_v17 }
  0x4c   :  { %604 = vmatpush3.bf16.msra.mxu0 %v658_v6  ;;  %634 = vmatpush3.bf16.msra.mxu1 %v673_v21 }
  0x4d   :  { %605 = vmatprep.subr.bf16.mxu0 %v659_v7  ;;  %635 = vmatprep.subr.bf16.mxu1 %v776_v17 }
  0x50   :  { %606 = vmatpush3.bf16.msra.mxu0 %v659_v7  ;;  %636 = vmatpush3.bf16.msra.mxu1 %v674_v22 }
  0x51   :  { %607 = vmatprep.subr.bf16.mxu0 %v660_v8  ;;  %637 = vmatprep.subr.bf16.mxu1 %v776_v17 }
  0x54   :  { %608 = vmatpush3.bf16.msra.mxu0 %v660_v8  ;;  %638 = vmatpush3.bf16.msra.mxu1 %v675_v23 }
  0x55   :  { %639 = vmatprep.subr.bf16.mxu1 %v776_v17 }
  0x57   :  { %610 = vmatmul.mubr.bf16.vlgmr.msra.gmra.mrb[0].mxu0 %v662_v9 }
  0x58   :  { %613 = vmatprep.mubr.bf16.mxu0 %v663_v10  ;;  %640 = vmatpush3.bf16.msra.mxu1 %v676_v24 }
  0x5f   :  { %614 = vmatmul.mubr.bf16.gmra.mrb[4].mxu0 %v664_v11 }
  0x60   :  { %617 = vmatprep.mubr.bf16.mxu0 %v665_v12 }
  0x67   :  { %618 = vmatmul.mubr.bf16.gmra.mrb[8].mxu0 %v666_v13 }
  0x68   :  { %621 = vmatprep.mubr.bf16.mxu0 %v667_v14 }
  0x6f   :  { %622 = vmatmul.mubr.bf16.gmra.mrb[12].mxu0 %v668_v15 }
 0x12a   :  { %v611_v25 = vpop.f32.mrb[0].mxu0 }
 0x12b   :  { %v225_v26 = vpop.f32.mrb[1].mxu0 }
 0x12c   :  { %v612_v27 = vpop.f32.mrb[2].mxu0 }
 0x12d   :  { %v295_v28 = vadd.f32 %v612_v27, %v611_v25  ;;  %v228_v29 = vpop.f32.mrb[3].mxu0 }
 0x12e   :  { %v288_v30 = vadd.f32 %v228_v29, %v225_v26 }
 0x12f   :  { %v296_v31 = vrot.slane %v295_v28, 4 }
 0x130   :  { %v289_v32 = vrot.slane %v288_v30, 4 }
 0x131   :  { %v297_v33 = vadd.f32 %v296_v31, %v295_v28 }
 0x132   :  { %v290_v34 = vadd.f32 %v289_v32, %v288_v30  ;;  %v615_v35 = vpop.f32.mrb[4].mxu0 }
 0x133   :  { %v298_v36 = vrot.slane %v297_v33, 2  ;;  %v241_v37 = vpop.f32.mrb[5].mxu0 }
 0x134   :  { %v291_v38 = vrot.slane %v290_v34, 2  ;;  %v616_v39 = vpop.f32.mrb[6].mxu0 }
 0x135   :  { %v299_v40 = vadd.f32 %v298_v36, %v297_v33  ;;  %v309_v41 = vadd.f32 %v616_v39, %v615_v35  ;;  %v244_v42 = vpop.f32.mrb[7].mxu0 }
 0x136   :  { %v292_v43 = vadd.f32 %v291_v38, %v290_v34  ;;  %v302_v44 = vadd.f32 %v244_v42, %v241_v37 }
 0x137   :  { %v300_v45 = vrot.slane %v299_v40, 1  ;;  %v310_v46 = vrot.slane %v309_v41, 4 }
 0x138   :  { %v293_v47 = vrot.slane %v292_v43, 1  ;;  %v303_v48 = vrot.slane %v302_v44, 4 }
 0x139   :  { %v301_v49 = vadd.f32 %v300_v45, %v299_v40  ;;  %v311_v50 = vadd.f32 %v310_v46, %v309_v41 }
 0x13a   :  { %v294_v52 = vadd.f32 %v293_v47, %v292_v43  ;;  %v304_v53 = vadd.f32 %v303_v48, %v302_v44  ;;  %v619_v54 = vpop.f32.mrb[8].mxu0 }
 0x13b   :  { %v345_v55 = vmul.f32 0.0625, %v301_v49  ;;  %v312_v56 = vrot.slane %v311_v50, 2  ;;  %v257_v57 = vpop.f32.mrb[9].mxu0 }
 0x13c   :  { %v344_v58 = vmul.f32 0.0625, %v294_v52  ;;  %v305_v59 = vrot.slane %v304_v53, 2  ;;  %v620_v60 = vpop.f32.mrb[10].mxu0 }
 0x13d   :  { %v360_v61 = vadd.f32 %v864_v51, %v345_v55  ;;  %v313_v62 = vadd.f32 %v312_v56, %v311_v50  ;;  %v323_v63 = vadd.f32 %v620_v60, %v619_v54  ;;  %v260_v0 = vpop.f32.mrb[11].mxu0 }
 0x13e   :  { %v359_v1 = vadd.f32 %v864_v51, %v344_v58  ;;  %v306_v2 = vadd.f32 %v305_v59, %v304_v53  ;;  %v316_v3 = vadd.f32 %v260_v0, %v257_v57 }
 0x13f   :  { %v368_v4 = vpack.c.bf16 %v360_v61, %v360_v61  ;;  %v314_v5 = vrot.slane %v313_v62, 1  ;;  %v324_v6 = vrot.slane %v323_v63, 4 }
 0x140   :  { %v367_v7 = vpack.c.bf16 %v359_v1, %v359_v1  ;;  %v307_v8 = vrot.slane %v306_v2, 1  ;;  %v317_v9 = vrot.slane %v316_v3, 4 }
 0x141   :  { %v407_v10 = vunpack.c.l.b16 %v368_v4  ;;  %v315_v11 = vadd.f32 %v314_v5, %v313_v62  ;;  %v325_v12 = vadd.f32 %v324_v6, %v323_v63 }
 0x142   :  { %v406_v13 = vunpack.c.l.b16 %v367_v7  ;;  %v308_v14 = vadd.f32 %v307_v8, %v306_v2  ;;  %v318_v15 = vadd.f32 %v317_v9, %v316_v3  ;;  %v623_v16 = vpop.f32.mrb[12].mxu0 }
 0x143   :  { %v414_v17 = vrot.slane %v407_v10, 7  ;;  %v347_v18 = vmul.f32 0.0625, %v315_v11  ;;  %v326_v19 = vrot.slane %v325_v12, 2  ;;  %v273_v20 = vpop.f32.mrb[13].mxu0 }
 0x144   :  { %v346_v21 = vmul.f32 0.0625, %v308_v14  ;;  %v319_v22 = vrot.slane %v318_v15, 2  ;;  %v624_v23 = vpop.f32.mrb[14].mxu0 }
 0x145   :  { %v416_v24 = vsel %vm415_vm1, %v414_v17, %v406_v13  ;;  %v362_v25 = vadd.f32 %v864_v51, %v347_v18  ;;  %v327_v26 = vadd.f32 %v326_v19, %v325_v12  ;;  %v337_v27 = vadd.f32 %v624_v23, %v623_v16  ;;  %v276_v28 = vpop.f32.mrb[15].mxu0  ;;  %v559_v18 = vld [vmem:[%s893_s4] ss:$0 sm:$0xff] }
 0x146   :  { %v361_v29 = vadd.f32 %v864_v51, %v346_v21  ;;  %v320_v30 = vadd.f32 %v319_v22, %v318_v15  ;;  %v330_v31 = vadd.f32 %v276_v28, %v273_v20 }
 0x147   :  { %v370_v32 = vpack.c.bf16 %v362_v25, %v362_v25  ;;  %v328_v33 = vrot.slane %v327_v26, 1  ;;  %v338_v34 = vrot.slane %v337_v27, 4 }
 0x148   :  { %v369_v35 = vpack.c.bf16 %v361_v29, %v361_v29  ;;  %v321_v36 = vrot.slane %v320_v30, 1  ;;  %v331_v37 = vrot.slane %v330_v31, 4 }
 0x149   :  { %v409_v38 = vunpack.c.l.b16 %v370_v32  ;;  %v329_v39 = vadd.f32 %v328_v33, %v327_v26  ;;  %v339_v40 = vadd.f32 %v338_v34, %v337_v27 }
 0x14a   :  { %v408_v41 = vunpack.c.l.b16 %v369_v35  ;;  %v322_v42 = vadd.f32 %v321_v36, %v320_v30  ;;  %v332_v43 = vadd.f32 %v331_v37, %v330_v31 }
 0x14b   :  { %v349_v44 = vmul.f32 0.0625, %v329_v39  ;;  %v340_v45 = vrot.slane %v339_v40, 2  ;;  %v420_v49 = vrot.slane %v409_v38, 5 }
 0x14c   :  { %v417_v46 = vrot.slane %v408_v41, 6  ;;  %v348_v47 = vmul.f32 0.0625, %v322_v42  ;;  %v333_v48 = vrot.slane %v332_v43, 2 }
 0x14d   :  { %v364_v50 = vadd.f32 %v864_v51, %v349_v44  ;;  %v341_v52 = vadd.f32 %v340_v45, %v339_v40 }
 0x14e   :  { %v419_v53 = vsel %vm418_vm2, %v417_v46, %v416_v24  ;;  %v363_v54 = vadd.f32 %v864_v51, %v348_v47  ;;  %v334_v55 = vadd.f32 %v333_v48, %v332_v43 }
 0x14f   :  { %v372_v56 = vpack.c.bf16 %v364_v50, %v364_v50  ;;  %v342_v57 = vrot.slane %v341_v52, 1  ;;  %v422_v58 = vsel %vm421_vm3, %v420_v49, %v419_v53 }
 0x150   :  { %v371_v59 = vpack.c.bf16 %v363_v54, %v363_v54  ;;  %v335_v60 = vrot.slane %v334_v55, 1 }
 0x151   :  { %v411_v61 = vunpack.c.l.b16 %v372_v56  ;;  %v343_v62 = vadd.f32 %v342_v57, %v341_v52 }
 0x152   :  { %v410_v63 = vunpack.c.l.b16 %v371_v59  ;;  %v336_v0 = vadd.f32 %v335_v60, %v334_v55 }
 0x153   :  { %v351_v1 = vmul.f32 0.0625, %v343_v62  ;;  %v426_v4 = vrot.slane %v411_v61, 3 }
 0x154   :  { %v423_v2 = vrot.slane %v410_v63, 4  ;;  %v350_v3 = vmul.f32 0.0625, %v336_v0 }
 0x155   :  { %v366_v5 = vadd.f32 %v864_v51, %v351_v1 }
 0x156   :  { %v365_v6 = vadd.f32 %v864_v51, %v350_v3  ;;  %v425_v7 = vsel %vm424_vm4, %v423_v2, %v422_v58 }
 0x157   :  { %v374_v8 = vpack.c.bf16 %v366_v5, %v366_v5  ;;  %v428_v9 = vsel %vm427_vm5, %v426_v4, %v425_v7 }
 0x158   :  { %v373_v10 = vpack.c.bf16 %v365_v6, %v365_v6 }
 0x159   :  { %v413_v11 = vunpack.c.l.b16 %v374_v8 }
 0x15a   :  { %v412_v12 = vunpack.c.l.b16 %v373_v10 }
 0x15b   :  { %v432_v14 = vrot.slane %v413_v11, 1 }
 0x15c   :  { %v429_v13 = vrot.slane %v412_v12, 2 }
 0x15e   :  { %v431_v15 = vsel %vm430_vm6, %v429_v13, %v428_v9 }
 0x15f   :  { %v434_v16 = vsel %vm433_vm7, %v432_v14, %v431_v15 }
 0x160   :  { %v435_v17 = vpack.c.b16 %v434_v16, %v434_v16 }
 0x162   :  { %642 = vmatmul.mubr.bf16.vlgmr.msra.gmra.mrb[0].mxu1 %v435_v17 }
 0x235   :  { %v519_v51 = vpop.f32.mrb[0].mxu1 }
 0x236   :  { %v520_v19 = vadd.f32 %v559_v18, %v519_v51  ;;  %v643_v20 = vpop.f32.mrb[1].mxu1 }
 0x237   :  { %v522_v21 = vpop.f32.mrb[2].mxu1 }
 0x238   :  { %525 = vst [vmem:[#allocation8] sm:$0xff] %v520_v19  ;;  %v644_v22 = vpop.f32.mrb[3].mxu1 }
 0x239   :  { %754 = shalt.err (!%p751_p0)
}
 0x23a   :  { %s755_s4 = scalar_lea.hbm %s894_s5, 128 }
 0x23b   :  { %p756_p1 = scmp.ne.s32.totalorder %s894_s5, %s755_s4  ;;  %p759_p2 = scmp.lt.u32.totalorder %s755_s4, %s894_s5 }
 0x23d   :  { %p761_p3 = pnand %p759_p2, %p756_p1 }
 0x23f   :  { %764 = shalt.err (!%p761_p3)
}
 0x240   :  { %535 = dma.vmem_to_hbm [thread:$0]  %s533_s7, 128, %s894_s5, [#allocation4]  }
 0x241   :  { %769 = dma.done.wait [#allocation4], 128  }
 0x242   :  { %770 = vsyncadd [#allocation4], 4294967168 }
 0x243   :  { %539 = vsyncpa [#allocation3], 1 }
 0x244   :  { %540 = vsyncpa [#allocation6], 1 }
 0x245   :  { %541 = vsyncpa [#allocation4], 1 }

</bundles_post_ra>
